<compile_context>
chip_gen: v5e
topology: v5e:2x2
jax: 0.10.0
libtpu: 0.0.40
codegen_flags: <defaults>
</compile_context>

<pallas_src>
import functools

import jax
import jax.numpy as jnp
from jax import lax
from jax.experimental import pallas as pl
from jax.experimental.pallas import tpu as pltpu

_LANE = 128
_SUBLANE = 8


def _round_up(n, m):
    return ((n + m - 1) // m) * m


def _mlp_kernel(x_ref, *refs, n_layers, act, regression, n_classes):
    """Fused MLP forward for one batch tile.

    refs = (w0, b0, w1, b1, ..., w_{L-1}, b_{L-1}, o_ref)
    w_i: (Fin_pad, Fout_pad) pre-transposed + zero-padded, b_i: (1, Fout_pad) zero-padded.
    """
    o_ref = refs[-1]
    wb = refs[:-1]

    h = x_ref[...]
    for i in range(n_layers):
        w = wb[2 * i][...]
        b = wb[2 * i + 1][...]
        h = jnp.dot(h, w, preferred_element_type=jnp.float32) + b
        if i < n_layers - 1:
            if act == "ReLU":
                h = jnp.maximum(h, 0.0)
            elif act == "Sigmoid":
                h = jax.nn.sigmoid(h)
            elif act == "Tanh":
                h = jnp.tanh(h)
            else:
                raise ValueError(f"unknown act_type {act!r}")
        # Padded lanes stay harmless: next layer's padded W rows are zero.

    if not regression:
        # softmax along dim=1 (classes); mask padded lanes with -inf so they get 0 probability.
        col = lax.broadcasted_iota(jnp.int32, h.shape, 1)
        h = jnp.where(col < n_classes, h, -jnp.inf)
        m = jnp.max(h, axis=1, keepdims=True)
        e = jnp.exp(h - m)
        s = jnp.sum(e, axis=1, keepdims=True)
        r = pl.reciprocal(s, approx=True)   # EUP slot, essentially free
        r = r * (2.0 - s * r)               # one Newton step -> tight row sums
        h = e * r

    o_ref[...] = h.astype(o_ref.dtype)


def prepare_params(params):
    """One-time prep: (Fout, Fin) PyTorch weights -> (Fin_pad, Fout_pad) zero-padded, transposed;
    biases -> (1, Fout_pad). Do NOT call this inside the hot forward path."""
    prepped = []
    for w, b in params:
        fout, fin = w.shape
        fin_p, fout_p = _round_up(fin, _LANE), _round_up(fout, _LANE)
        w_t = jnp.zeros((fin_p, fout_p), jnp.float32).at[:fin, :fout].set(jnp.transpose(w))
        b_p = jnp.zeros((1, fout_p), jnp.float32).at[0, :fout].set(b)
        prepped.append((w_t, b_p))
    return prepped


@functools.partial(
    jax.jit, static_argnames=("out_features", "act_type", "regression", "block_b")
)
def mlp_forward(x, prepped, *, out_features, act_type="ReLU", regression=False, block_b=256):
    """Reproduces MLP.forward: hidden layers get act_func, last layer is raw (regression=True)
    or softmax(dim=1) (regression=False). `prepped` comes from prepare_params()."""
    B, F0 = x.shape
    n_layers = len(prepped)
    f0_pad = prepped[0][0].shape[0]
    fL_pad = prepped[-1][0].shape[1]

    # Batch tile: multiple of 8 sublanes; capped so double-buffered tiles + resident weights
    # fit easily inside v7x's 64 MiB VMEM (scoped default ~32 MiB).
    tb = min(_round_up(block_b, _SUBLANE), _round_up(B, _SUBLANE))
    b_pad = _round_up(B, tb)

    # Pad input once (fused under jit). Padded rows/lanes are zeros and are sliced off below.
    x_p = jnp.zeros((b_pad, f0_pad), jnp.float32).at[:B, :F0].set(x.astype(jnp.float32))

    flat_wb = []
    in_specs = [pl.BlockSpec((tb, f0_pad), lambda i: (i, 0))]
    for w, b in prepped:
        flat_wb += [w, b]
        # Constant index_map -> weights/biases DMA'd once and stay VMEM-resident across the grid.
        in_specs.append(pl.BlockSpec(w.shape, lambda i: (0, 0)))
        in_specs.append(pl.BlockSpec(b.shape, lambda i: (0, 0)))

    kernel = functools.partial(
        _mlp_kernel,
        n_layers=n_layers,
        act=act_type,
        regression=regression,
        n_classes=out_features,
    )

    out_p = pl.pallas_call(
        kernel,
        out_shape=jax.ShapeDtypeStruct((b_pad, fL_pad), jnp.float32),
        grid=(b_pad // tb,),
        in_specs=in_specs,
        out_specs=pl.BlockSpec((tb, fL_pad), lambda i: (i, 0)),
        compiler_params=pltpu.CompilerParams(dimension_semantics=("parallel",)),
    )(x_p, *flat_wb)

    return out_p[:B, :out_features]


def init_params(key, layers):
    """Deterministic nn.Linear-style init: W ~ U(-k, k), b ~ U(-k, k), k = 1/sqrt(fan_in).
    Weights kept in PyTorch (Fout, Fin) layout; prepare_params() converts them once."""
    params = []
    for i in range(len(layers) - 1):
        fan_in, fan_out = layers[i], layers[i + 1]
        key, kw, kb = jax.random.split(key, 3)
        bound = 1.0 / jnp.sqrt(fan_in)
        w = jax.random.uniform(kw, (fan_out, fan_in), jnp.float32, -bound, bound)
        b = jax.random.uniform(kb, (fan_out,), jnp.float32, -bound, bound)
        params.append((w, b))
    return params


def mlp_reference(x, params, act_type="ReLU", regression=False):
    """Pure-JAX reference matching the PyTorch forward."""
    acts = {"ReLU": jax.nn.relu, "Sigmoid": jax.nn.sigmoid, "Tanh": jnp.tanh}
    h = x
    for w, b in params[:-1]:
        h = acts[act_type](h @ w.T + b)
    w, b = params[-1]
    h = h @ w.T + b
    return h if regression else jax.nn.softmax(h, axis=1)


# TODO(synk): fit()/predict() training loop (Adam/SGD, backward pass) is host-side orchestration,
# not a forward kernel; only the forward pass is implemented here.

if __name__ == "__main__":
    key = jax.random.PRNGKey(0)
    layers = [32, 64, 48, 10]     # MLP(..., layers=[32, 64, 48, 10])
    batch = 8

    kx, kp = jax.random.split(key)
    x = jax.random.normal(kx, (batch, layers[0]), jnp.float32)
    params = init_params(kp, layers)
    prepped = prepare_params(params)   # one-time: transpose + lane-pad weights/biases

    out = mlp_forward(
        x, prepped, out_features=layers[-1], act_type="ReLU", regression=False
    )
    out = jax.block_until_ready(out)

    assert out.shape == (batch, layers[-1])

    # sanity 1: softmax rows sum to 1 (Newton-refined reciprocal keeps this tight)
    row_sums = jnp.sum(out, axis=1)
    assert bool(jnp.all(jnp.abs(row_sums - 1.0) < 1e-4)), row_sums

    # sanity 2: matches pure-JAX reference of the PyTorch forward
    ref = mlp_reference(x, params, act_type="ReLU", regression=False)
    max_err = float(jnp.max(jnp.abs(out - ref)))
    assert max_err < 1e-4, max_err

    print("KERNEL_OK")
</pallas_src>

<mosaic_0001>
module attributes {stable_mosaic.version = 11 : i64} {
  func.func @_mlp_kernel(%arg0: i32, %arg1: memref<8x128xf32, #tpu.memory_space<vmem>>, %arg2: memref<128x128xf32, #tpu.memory_space<vmem>>, %arg3: memref<1x128xf32, #tpu.memory_space<vmem>>, %arg4: memref<128x128xf32, #tpu.memory_space<vmem>>, %arg5: memref<1x128xf32, #tpu.memory_space<vmem>>, %arg6: memref<128x128xf32, #tpu.memory_space<vmem>>, %arg7: memref<1x128xf32, #tpu.memory_space<vmem>>, %arg8: memref<8x128xf32, #tpu.memory_space<vmem>>) attributes {dimension_semantics = [#tpu.dimension_semantics<parallel>], iteration_bounds = array<i64: 1>, scalar_prefetch = 0 : i64, scratch_operands = 0 : i64, tpu.core_type = #tpu.core_type<tc>, window_params = [{transform_indices = @transform_0, window_bounds = array<i64: 8, 128>}, {pipeline_mode = #tpu.pipeline_mode<synchronous>, transform_indices = @transform_1, window_bounds = array<i64: 128, 128>}, {pipeline_mode = #tpu.pipeline_mode<synchronous>, transform_indices = @transform_2, window_bounds = array<i64: 1, 128>}, {pipeline_mode = #tpu.pipeline_mode<synchronous>, transform_indices = @transform_3, window_bounds = array<i64: 128, 128>}, {pipeline_mode = #tpu.pipeline_mode<synchronous>, transform_indices = @transform_4, window_bounds = array<i64: 1, 128>}, {pipeline_mode = #tpu.pipeline_mode<synchronous>, transform_indices = @transform_5, window_bounds = array<i64: 128, 128>}, {pipeline_mode = #tpu.pipeline_mode<synchronous>, transform_indices = @transform_6, window_bounds = array<i64: 1, 128>}, {transform_indices = @transform_7, window_bounds = array<i64: 8, 128>}]} {
    %c0 = arith.constant 0 : index
    %c0_0 = arith.constant 0 : index
    %0 = vector.load %arg1[%c0, %c0_0] : memref<8x128xf32, #tpu.memory_space<vmem>>, vector<8x128xf32>
    %c0_1 = arith.constant 0 : index
    %c0_2 = arith.constant 0 : index
    %1 = vector.load %arg2[%c0_1, %c0_2] : memref<128x128xf32, #tpu.memory_space<vmem>>, vector<128x128xf32>
    %c0_3 = arith.constant 0 : index
    %c0_4 = arith.constant 0 : index
    %2 = vector.load %arg3[%c0_3, %c0_4] : memref<1x128xf32, #tpu.memory_space<vmem>>, vector<1x128xf32>
    %cst = arith.constant dense<0.000000e+00> : vector<8x128xf32>
    %3 = tpu.matmul %0, %1, %cst {dimension_numbers = #tpu.dot_dimension_numbers<[1], [0], [0], [1], [0, 0, 1, 1], [], []>} : vector<8x128xf32>, vector<128x128xf32>, vector<8x128xf32> -> vector<8x128xf32>
    %4 = vector.broadcast %2 : vector<1x128xf32> to vector<8x128xf32>
    %5 = arith.addf %3, %4 : vector<8x128xf32>
    %cst_5 = arith.constant 0.000000e+00 : f32
    %6 = vector.broadcast %cst_5 : f32 to vector<8x128xf32>
    %7 = arith.maximumf %5, %6 : vector<8x128xf32>
    %c0_6 = arith.constant 0 : index
    %c0_7 = arith.constant 0 : index
    %8 = vector.load %arg4[%c0_6, %c0_7] : memref<128x128xf32, #tpu.memory_space<vmem>>, vector<128x128xf32>
    %c0_8 = arith.constant 0 : index
    %c0_9 = arith.constant 0 : index
    %9 = vector.load %arg5[%c0_8, %c0_9] : memref<1x128xf32, #tpu.memory_space<vmem>>, vector<1x128xf32>
    %cst_10 = arith.constant dense<0.000000e+00> : vector<8x128xf32>
    %10 = tpu.matmul %7, %8, %cst_10 {dimension_numbers = #tpu.dot_dimension_numbers<[1], [0], [0], [1], [0, 0, 1, 1], [], []>} : vector<8x128xf32>, vector<128x128xf32>, vector<8x128xf32> -> vector<8x128xf32>
    %11 = vector.broadcast %9 : vector<1x128xf32> to vector<8x128xf32>
    %12 = arith.addf %10, %11 : vector<8x128xf32>
    %cst_11 = arith.constant 0.000000e+00 : f32
    %13 = vector.broadcast %cst_11 : f32 to vector<8x128xf32>
    %14 = arith.maximumf %12, %13 : vector<8x128xf32>
    %c0_12 = arith.constant 0 : index
    %c0_13 = arith.constant 0 : index
    %15 = vector.load %arg6[%c0_12, %c0_13] : memref<128x128xf32, #tpu.memory_space<vmem>>, vector<128x128xf32>
    %c0_14 = arith.constant 0 : index
    %c0_15 = arith.constant 0 : index
    %16 = vector.load %arg7[%c0_14, %c0_15] : memref<1x128xf32, #tpu.memory_space<vmem>>, vector<1x128xf32>
    %cst_16 = arith.constant dense<0.000000e+00> : vector<8x128xf32>
    %17 = tpu.matmul %14, %15, %cst_16 {dimension_numbers = #tpu.dot_dimension_numbers<[1], [0], [0], [1], [0, 0, 1, 1], [], []>} : vector<8x128xf32>, vector<128x128xf32>, vector<8x128xf32> -> vector<8x128xf32>
    %18 = vector.broadcast %16 : vector<1x128xf32> to vector<8x128xf32>
    %19 = arith.addf %17, %18 : vector<8x128xf32>
    %20 = tpu.iota {dimensions = array<i32: 1>} : vector<8x128xi32>
    %c10_i32 = arith.constant 10 : i32
    %21 = vector.broadcast %c10_i32 : i32 to vector<8x128xi32>
    %22 = arith.cmpi slt, %20, %21 : vector<8x128xi32>
    %cst_17 = arith.constant 0xFF800000 : f32
    %23 = vector.broadcast %cst_17 : f32 to vector<8x128xf32>
    %24 = arith.select %22, %19, %23 : vector<8x128xi1>, vector<8x128xf32>
    %cst_18 = arith.constant dense<0xFF800000> : vector<8xf32>
    %25 = vector.multi_reduction <maximumf>, %24, %cst_18 [1] : vector<8x128xf32> to vector<8xf32>
    %26 = vector.shape_cast %25 : vector<8xf32> to vector<8x1xf32>
    %27 = vector.broadcast %26 : vector<8x1xf32> to vector<8x128xf32>
    %28 = arith.subf %24, %27 : vector<8x128xf32>
    %29 = math.exp %28 : vector<8x128xf32>
    %cst_19 = arith.constant dense<0.000000e+00> : vector<8xf32>
    %30 = vector.multi_reduction <add>, %29, %cst_19 [1] : vector<8x128xf32> to vector<8xf32>
    %31 = vector.shape_cast %30 : vector<8xf32> to vector<8x1xf32>
    %32 = tpu.reciprocal %31 {approx = true} : vector<8x1xf32> -> vector<8x1xf32>
    %33 = arith.mulf %31, %32 : vector<8x1xf32>
    %cst_20 = arith.constant 2.000000e+00 : f32
    %34 = vector.broadcast %cst_20 : f32 to vector<8x1xf32>
    %35 = arith.subf %34, %33 : vector<8x1xf32>
    %36 = arith.mulf %32, %35 : vector<8x1xf32>
    %37 = vector.broadcast %36 : vector<8x1xf32> to vector<8x128xf32>
    %38 = arith.mulf %29, %37 : vector<8x128xf32>
    %c0_21 = arith.constant 0 : index
    %c0_22 = arith.constant 0 : index
    %39 = vector.load %arg8[%c0_21, %c0_22] : memref<8x128xf32, #tpu.memory_space<vmem>>, vector<8x128xf32>
    tpu.vector_store %arg8[%c0_21, %c0_22], %38 {strides = array<i32>} : memref<8x128xf32, #tpu.memory_space<vmem>>, vector<8x128xf32>,
    return
  }
  func.func @transform_0(%arg0: i32) -> (i32, i32) {
    %c0_i32 = arith.constant 0 : i32
    %c0_i32_0 = arith.constant 0 : i32
    return %arg0, %c0_i32 : i32, i32
  }
  func.func @transform_1(%arg0: i32) -> (i32, i32) {
    %c0_i32 = arith.constant 0 : i32
    %c0_i32_0 = arith.constant 0 : i32
    %c0_i32_1 = arith.constant 0 : i32
    return %c0_i32, %c0_i32_0 : i32, i32
  }
  func.func @transform_2(%arg0: i32) -> (i32, i32) {
    %c0_i32 = arith.constant 0 : i32
    %c0_i32_0 = arith.constant 0 : i32
    %c0_i32_1 = arith.constant 0 : i32
    return %c0_i32, %c0_i32_0 : i32, i32
  }
  func.func @transform_3(%arg0: i32) -> (i32, i32) {
    %c0_i32 = arith.constant 0 : i32
    %c0_i32_0 = arith.constant 0 : i32
    %c0_i32_1 = arith.constant 0 : i32
    return %c0_i32, %c0_i32_0 : i32, i32
  }
  func.func @transform_4(%arg0: i32) -> (i32, i32) {
    %c0_i32 = arith.constant 0 : i32
    %c0_i32_0 = arith.constant 0 : i32
    %c0_i32_1 = arith.constant 0 : i32
    return %c0_i32, %c0_i32_0 : i32, i32
  }
  func.func @transform_5(%arg0: i32) -> (i32, i32) {
    %c0_i32 = arith.constant 0 : i32
    %c0_i32_0 = arith.constant 0 : i32
    %c0_i32_1 = arith.constant 0 : i32
    return %c0_i32, %c0_i32_0 : i32, i32
  }
  func.func @transform_6(%arg0: i32) -> (i32, i32) {
    %c0_i32 = arith.constant 0 : i32
    %c0_i32_0 = arith.constant 0 : i32
    %c0_i32_1 = arith.constant 0 : i32
    return %c0_i32, %c0_i32_0 : i32, i32
  }
  func.func @transform_7(%arg0: i32) -> (i32, i32) {
    %c0_i32 = arith.constant 0 : i32
    %c0_i32_0 = arith.constant 0 : i32
    return %arg0, %c0_i32 : i32, i32
  }
}

</mosaic_0001>

<bundles_post_ra>
// kernel: mlp_forward.1
= control target key start
LH: loop header
LB: loop body
LE: loop exit
PB: predicated region body
PF: predicated region fallthrough
CT: control target
= control target key end

     0   :  { %12 = vsyncpa [#allocation3], 0  ;;  %s417_s0 = inlined_call_operand.vmem [shape: f32[8,128], index: 0, kind: input, shape index: {}]   ;;  %s418_s1 = inlined_call_operand.hbm [shape: f32[128,128], index: 1, kind: input, shape index: {}]   ;;  %s419_s2 = inlined_call_operand.vmem [shape: f32[1,128], index: 2, kind: input, shape index: {}]   ;;  %s420_s3 = inlined_call_operand.hbm [shape: f32[128,128], index: 3, kind: input, shape index: {}]   ;;  %s421_s4 = inlined_call_operand.vmem [shape: f32[1,128], index: 4, kind: input, shape index: {}]   ;;  %s422_s5 = inlined_call_operand.hbm [shape: f32[128,128], index: 5, kind: input, shape index: {}]   ;;  %s423_s6 = inlined_call_operand.vmem [shape: f32[1,128], index: 6, kind: input, shape index: {}]   ;;  %s424_s7 = inlined_call_operand.hbm [shape: f32[8,128], index: 7, kind: output, shape index: {}]  }
   0x1   :  { %13 = vsyncpa [#allocation6], 0 }
   0x2   :  { %14 = vsyncpa [#allocation4], 0  ;;  %s36_s26 = sshll.u32 %s420_s3, 4  ;;  %s347_s27 = smov [#allocation5]   ;;  %s37_s26 = int_to_ptr.hbm [resolvable:$true] %s36_s26 }
   0x3   :  { %s38_s28 = sshll.u32 %s347_s27, 4  ;;  %s21_s8 = sshll.u32 %s418_s1, 4  ;;  %s39_s28 = int_to_ptr.vmem [resolvable:$true] %s38_s28  ;;  %s22_s8 = int_to_ptr.hbm [resolvable:$true] %s21_s8 }
   0x4   :  { %s348_s9 = smov 128   ;;  %s349_s10 = smov 8  }
   0x5   :  { %44 = dma.hbm_to_vmem [thread:$0]  %s37_s26, 2048, %s39_s28, [#allocation6], %s348_s9, %s348_s9, %s349_s10  }
   0x6   :  { %s350_s11 = smov [#allocation2]   ;;  %s51_s15 = sshll.u32 %s422_s5, 4  ;;  %s52_s15 = int_to_ptr.hbm [resolvable:$true] %s51_s15 }
   0x7   :  { %s23_s12 = sshll.u32 %s350_s11, 4  ;;  %s351_s3 = smov [#allocation7]   ;;  %s24_s12 = int_to_ptr.vmem [resolvable:$true] %s23_s12 }
   0x8   :  { %29 = dma.hbm_to_vmem [thread:$0]  %s22_s8, 2048, %s24_s12, [#allocation3], %s348_s9, %s348_s9, %s349_s10  }
   0x9   :  { %s53_s16 = sshll.u32 %s351_s3, 4  ;;  %s54_s16 = int_to_ptr.vmem [resolvable:$true] %s53_s16 }
   0xa   :  { %59 = dma.hbm_to_vmem [thread:$0]  %s52_s15, 2048, %s54_s16, [#allocation6], %s348_s9, %s348_s9, %s349_s10  }
   0xb   :  { %341 = dma.done.wait [#allocation3], 2048  }
   0xc   :  { %342 = vsyncadd [#allocation3], 4294965248 }
   0xd   :  { %343 = dma.done.wait [#allocation6], 4096  }
   0xe   :  { %344 = vsyncadd [#allocation6], 4294963200  ;;  %v90_v0 = vld [vmem:[#allocation2 + $0x78] sm:$0xff]  ;;  %v89_v1 = vld [vmem:[#allocation2 + $0x70] sm:$0xff]  ;;  %v197_v57 = vlaneseq  ;;  %s221_s23 = sshll.u32 %s424_s7, 4  ;;  %s222_s23 = int_to_ptr.hbm [resolvable:$true] %s221_s23 }
   0xf   :  { %95 = vmatpush.msra.mxu0 %v90_v0  ;;  %v88_v2 = vld [vmem:[#allocation2 + $0x68] sm:$0xff]  ;;  %v87_v3 = vld [vmem:[#allocation2 + $0x60] sm:$0xff]  ;;  %v131_v4 = vld [vmem:[#allocation5 + $0x78] sm:$0xff] }
  0x10   :  { %v86_v5 = vld [vmem:[#allocation2 + $0x58] sm:$0xff]  ;;  %136 = vmatpush.msra.mxu1 %v131_v4  ;;  %v130_v6 = vld [vmem:[#allocation5 + $0x70] sm:$0xff]  ;;  %v129_v7 = vld [vmem:[#allocation5 + $0x68] sm:$0xff]  ;;  %v198_v58 = vand.u32 127, %v197_v57 }
  0x11   :  { %96 = vmatpush.msra.mxu0 %v89_v1  ;;  %v85_v8 = vld [vmem:[#allocation2 + $0x50] sm:$0xff]  ;;  %v128_v9 = vld [vmem:[#allocation5 + $0x60] sm:$0xff]  ;;  %v84_v10 = vld [vmem:[#allocation2 + $0x48] sm:$0xff] }
  0x12   :  { %137 = vmatpush.msra.mxu1 %v130_v6  ;;  %v127_v11 = vld [vmem:[#allocation5 + $0x58] sm:$0xff]  ;;  %v83_v12 = vld [vmem:[#allocation2 + $0x40] sm:$0xff]  ;;  %v126_v13 = vld [vmem:[#allocation5 + $0x50] sm:$0xff]  ;;  %vm199_vm0 = vcmp.lt.s32.totalorder %v198_v58, 10 }
  0x13   :  { %97 = vmatpush.msra.mxu0 %v88_v2  ;;  %v82_v14 = vld [vmem:[#allocation2 + $0x38] sm:$0xff]  ;;  %v125_v15 = vld [vmem:[#allocation5 + $0x48] sm:$0xff]  ;;  %v81_v16 = vld [vmem:[#allocation2 + $0x30] sm:$0xff] }
  0x14   :  { %138 = vmatpush.msra.mxu1 %v129_v7  ;;  %v124_v17 = vld [vmem:[#allocation5 + $0x40] sm:$0xff]  ;;  %v80_v18 = vld [vmem:[#allocation2 + $0x28] sm:$0xff]  ;;  %v123_v19 = vld [vmem:[#allocation5 + $0x38] sm:$0xff] }
  0x15   :  { %98 = vmatpush.msra.mxu0 %v87_v3  ;;  %v79_v20 = vld [vmem:[#allocation2 + $0x20] sm:$0xff]  ;;  %v122_v21 = vld [vmem:[#allocation5 + $0x30] sm:$0xff]  ;;  %v78_v22 = vld [vmem:[#allocation2 + $0x18] sm:$0xff] }
  0x16   :  { %139 = vmatpush.msra.mxu1 %v128_v9  ;;  %v121_v23 = vld [vmem:[#allocation5 + $0x28] sm:$0xff]  ;;  %v77_v24 = vld [vmem:[#allocation2 + $0x10] sm:$0xff]  ;;  %v120_v25 = vld [vmem:[#allocation5 + $0x20] sm:$0xff] }
  0x17   :  { %99 = vmatpush.msra.mxu0 %v86_v5  ;;  %v76_v26 = vld [vmem:[#allocation2 + $0x8] sm:$0xff]  ;;  %v119_v27 = vld [vmem:[#allocation5 + $0x18] sm:$0xff]  ;;  %v75_v28 = vld [vmem:[#allocation2] sm:$0xff] }
  0x18   :  { %140 = vmatpush.msra.mxu1 %v127_v11  ;;  %v74_v29 = vld [vmem:[%s417_s0] sm:$0xff]  ;;  %v118_v30 = vld [vmem:[#allocation5 + $0x10] sm:$0xff]  ;;  %v117_v31 = vld [vmem:[#allocation5 + $0x8] sm:$0xff] }
  0x19   :  { %100 = vmatpush.msra.mxu0 %v85_v8  ;;  %v116_v32 = vld [vmem:[#allocation5] sm:$0xff]  ;;  %v172_v33 = vld [vmem:[#allocation7 + $0x78] sm:$0xff]  ;;  %v171_v34 = vld [vmem:[#allocation7 + $0x70] sm:$0xff] }
  0x1a   :  { %141 = vmatpush.msra.mxu1 %v126_v13  ;;  %177 = vmatpush.msra.mxu2 %v172_v33  ;;  %v170_v35 = vld [vmem:[#allocation7 + $0x68] sm:$0xff]  ;;  %v169_v36 = vld [vmem:[#allocation7 + $0x60] sm:$0xff]  ;;  %v168_v37 = vld [vmem:[#allocation7 + $0x58] sm:$0xff] }
  0x1b   :  { %101 = vmatpush.msra.mxu0 %v84_v10  ;;  %v167_v38 = vld [vmem:[#allocation7 + $0x50] sm:$0xff]  ;;  %v166_v39 = vld [vmem:[#allocation7 + $0x48] sm:$0xff]  ;;  %v165_v40 = vld [vmem:[#allocation7 + $0x40] sm:$0xff] }
  0x1c   :  { %142 = vmatpush.msra.mxu1 %v125_v15  ;;  %178 = vmatpush.msra.mxu2 %v171_v34  ;;  %v164_v41 = vld [vmem:[#allocation7 + $0x38] sm:$0xff]  ;;  %v163_v42 = vld [vmem:[#allocation7 + $0x30] sm:$0xff]  ;;  %v162_v43 = vld [vmem:[#allocation7 + $0x28] sm:$0xff] }
  0x1d   :  { %102 = vmatpush.msra.mxu0 %v83_v12  ;;  %v161_v44 = vld [vmem:[#allocation7 + $0x20] sm:$0xff]  ;;  %v160_v45 = vld [vmem:[#allocation7 + $0x18] sm:$0xff]  ;;  %v159_v50 = vld [vmem:[#allocation7 + $0x10] sm:$0xff] }
  0x1e   :  { %143 = vmatpush.msra.mxu1 %v124_v17  ;;  %179 = vmatpush.msra.mxu2 %v170_v35  ;;  %v238_v46 = vld [vmem:[%s419_s2] ss:$0 sm:$0xff]  ;;  %v158_v51 = vld [vmem:[#allocation7 + $0x8] sm:$0xff] }
  0x1f   :  { %103 = vmatpush.msra.mxu0 %v82_v14  ;;  %v157_v52 = vld [vmem:[#allocation7] sm:$0xff] }
  0x20   :  { %144 = vmatpush.msra.mxu1 %v123_v19  ;;  %180 = vmatpush.msra.mxu2 %v169_v36  ;;  %v239_v53 = vld [vmem:[%s421_s4] ss:$0 sm:$0xff]  ;;  %s352_s4 = smov [#allocation8]  }
  0x21   :  { %104 = vmatpush.msra.mxu0 %v81_v16  ;;  %v240_v59 = vld [vmem:[%s423_s6] ss:$0 sm:$0xff]  ;;  %s219_s21 = sshll.u32 %s352_s4, 4  ;;  %s220_s21 = int_to_ptr.vmem [resolvable:$true] %s219_s21 }
  0x22   :  { %145 = vmatpush.msra.mxu1 %v122_v21  ;;  %181 = vmatpush.msra.mxu2 %v168_v37 }
  0x23   :  { %105 = vmatpush.msra.mxu0 %v80_v18 }
  0x24   :  { %146 = vmatpush.msra.mxu1 %v121_v23  ;;  %182 = vmatpush.msra.mxu2 %v167_v38 }
  0x25   :  { %106 = vmatpush.msra.mxu0 %v79_v20 }
  0x26   :  { %147 = vmatpush.msra.mxu1 %v120_v25  ;;  %183 = vmatpush.msra.mxu2 %v166_v39 }
  0x27   :  { %107 = vmatpush.msra.mxu0 %v78_v22 }
  0x28   :  { %148 = vmatpush.msra.mxu1 %v119_v27  ;;  %184 = vmatpush.msra.mxu2 %v165_v40 }
  0x29   :  { %108 = vmatpush.msra.mxu0 %v77_v24 }
  0x2a   :  { %149 = vmatpush.msra.mxu1 %v118_v30  ;;  %185 = vmatpush.msra.mxu2 %v164_v41 }
  0x2b   :  { %109 = vmatpush.msra.mxu0 %v76_v26 }
  0x2c   :  { %150 = vmatpush.msra.mxu1 %v117_v31  ;;  %186 = vmatpush.msra.mxu2 %v163_v42 }
  0x2d   :  { %110 = vmatpush.msra.mxu0 %v75_v28 }
  0x2e   :  { %111 = vmatmul.f32.vlgmr.msra.gmra.mxu0 %v74_v29  ;;  %151 = vmatpush.msra.mxu1 %v116_v32 }
  0x2f   :  { %187 = vmatpush.msra.mxu2 %v162_v43 }
  0x31   :  { %188 = vmatpush.msra.mxu2 %v161_v44 }
  0x33   :  { %189 = vmatpush.msra.mxu2 %v160_v45 }
  0x35   :  { %190 = vmatpush.msra.mxu2 %v159_v50 }
  0x37   :  { %191 = vmatpush.msra.mxu2 %v158_v51 }
  0x39   :  { %192 = vmatpush.msra.mxu2 %v157_v52 }
  0xab   :  { %v112_v47 = vpop.f32.mrf.mxu0 }
  0xac   :  { %v113_v48 = vadd.f32 %v238_v46, %v112_v47 }
  0xae   :  { %v115_v49 = vmax.f32 %v113_v48, 0.0 }
  0xb0   :  { %152 = vmatmul.f32.vlgmr.msra.gmra.mxu1 %v115_v49 }
 0x12d   :  { %v153_v54 = vpop.f32.mrf.mxu1 }
 0x12e   :  { %v154_v55 = vadd.f32 %v239_v53, %v153_v54 }
 0x130   :  { %v156_v56 = vmax.f32 %v154_v55, 0.0 }
 0x132   :  { %193 = vmatmul.f32.vlgmr.msra.gmra.mxu2 %v156_v56 }
 0x1b5   :  { %v194_v60 = vpop.f32.mrf.mxu2 }
 0x1b6   :  { %v195_v61 = vadd.f32 %v240_v59, %v194_v60 }
 0x1b8   :  { %v200_v62 = vsel %vm199_vm0, %v195_v61, -inf }
 0x1b9   :  { %201 = vmax.xlane.f32.xlu0 %v200_v62 }
 0x22c   :  { %v202_v63 = vpop.xlane.xlu0 %201 }
 0x22d   :  { %v203_v0 = vsub.f32 %v200_v62, %v202_v63 }
 0x22f   :  { %v204_v1 = vmul.f32 1.442695, %v203_v0 }
 0x231   :  { %241 = vpow2.f32 %v204_v1 }
 0x237   :  { %v242_v2 = vpop.eup %241 }
 0x238   :  { %206 = vadd.xlane.f32.xlu0 %v242_v2 }
 0x2ab   :  { %v207_v3 = vpop.xlane.xlu0 %206 }
 0x2ac   :  { %243 = vrcp.f32 %v207_v3 }
 0x2b2   :  { %v244_v4 = vpop.eup %243 }
 0x2b3   :  { %v209_v5 = vmul.f32 %v244_v4, %v207_v3 }
 0x2b5   :  { %v210_v6 = vsub.f32 2.0, %v209_v5 }
 0x2b7   :  { %v211_v7 = vmul.f32 %v244_v4, %v210_v6 }
 0x2b9   :  { %v212_v8 = vmul.f32 %v242_v2, %v211_v7 }
 0x2bb   :  { %213 = vst [vmem:[#allocation8] sm:$0xff] %v212_v8 }
 0x2bc   :  { %224 = dma.vmem_to_hbm [thread:$0]  %s220_s21, 128, %s222_s23, [#allocation4]  }
 0x2bd   :  { %345 = dma.done.wait [#allocation4], 128  }
 0x2be   :  { %346 = vsyncadd [#allocation4], 4294967168 }
 0x2bf   :  { %229 = vsyncpa [#allocation3], 1 }
 0x2c0   :  { %230 = vsyncpa [#allocation6], 1 }
 0x2c1   :  { %231 = vsyncpa [#allocation4], 1 }

</bundles_post_ra>
